<compile_context>
chip_gen: v7x
topology: tpu7x:2x2x1
jax: 0.10.0
libtpu: 0.0.40
codegen_flags: <defaults>
</compile_context>

<pallas_src>
import jax
import jax.numpy as jnp
from jax.experimental import pallas as pl
from jax.experimental.pallas import tpu as pltpu


def _round_up(x, m):
    return (x + m - 1) // m * m


def _pick_packing(h):
    """Return (Hp, P): pad H -> Hp (a divisor of 128, or a multiple of 128 for
    H > 128) and pack P = 128 // Hp original rows per 128-lane packed row."""
    if h <= 128:
        for d in (8, 16, 32, 64, 128):
            if d >= h:
                return d, 128 // d
    return _round_up(h, 128), 1


def _discriminator_kernel(up1, up2, un1, un2, ip1, ip2, in1, in2,
                          wu_blk, wi_blk, sel, bu, bi, out_ref):
    f32 = jnp.float32

    # --- MXU: four left projections against the block-diagonal weight.  In
    # the packed layout, Hp-lane group g of packed row r holds x[P*r+g,:] @ W.
    # No concatenate copies; weights are VMEM-resident across grid steps. ---
    pu1 = jnp.dot(up1[...], wu_blk[...], preferred_element_type=f32)
    pu2 = jnp.dot(up2[...], wu_blk[...], preferred_element_type=f32)
    pi1 = jnp.dot(ip1[...], wi_blk[...], preferred_element_type=f32)
    pi2 = jnp.dot(ip2[...], wi_blk[...], preferred_element_type=f32)

    s = sel[...]                       # (L, selw) group-selector (0/1)
    p = out_ref.shape[1] // 10         # original rows packed per lane row
    b_u = bu[0]
    b_i = bi[0]

    x_up2 = up2[...]
    x_ip2 = ip2[...]
    x_un1 = un1[...]
    x_un2 = un2[...]
    x_in1 = in1[...]
    x_in2 = in2[...]

    # Row order matches torch.cat((u0, i0, u1, u2, u3, u4, i1, i2, i3, i4), 1).
    rows = (
        (pu1, x_up2, b_u), (pi1, x_ip2, b_i),
        (pu1, x_un1, b_u), (pu1, x_un2, b_u),
        (pu2, x_un1, b_u), (pu2, x_un2, b_u),
        (pi1, x_in1, b_i), (pi1, x_in2, b_i),
        (pi2, x_in1, b_i), (pi2, x_in2, b_i),
    )
    for k, (proj, rhs, b) in enumerate(rows):
        # Lane-dense elementwise product (VPU), then the per-row Hp-group
        # reduction offloaded to the idle MXU via the group selector.
        r = jnp.dot(proj * rhs, s, preferred_element_type=f32)  # (tile_q, selw)
        out_ref[:, k * p:(k + 1) * p] = r[:, :p] + b


def discriminator_forward(u_pos1, u_pos2, u_neg1, u_neg2,
                          i_pos1, i_pos2, i_neg1, i_neg2,
                          w_u, b_u, w_i, b_i):
    """Pallas equivalent of Discriminator.forward. Returns (1, 10*N) float32."""
    N, H = u_pos1.shape
    Hp, P = _pick_packing(H)
    L = Hp * P                         # packed lane width (>= 128)
    selw = max(P, 8)                   # keep the reduce-matmul N-dim >= 8

    feats = [u_pos1, u_pos2, u_neg1, u_neg2, i_pos1, i_pos2, i_neg1, i_neg2]

    # Pad only when necessary: rows to a multiple of P (and at least 8 packed
    # rows), columns to Hp.  Zero padding is sliced away after the kernel; the
    # common case (H=32, N % 4 == 0, N >= 32) needs no padding pass at all.
    Nr = max(_round_up(N, P), 8 * P)
    if Nr != N or Hp != H:
        feats = [jnp.pad(f, ((0, Nr - N), (0, Hp - H))) for f in feats]
    Q = Nr // P
    # Free row-major reshape: (Nr, Hp) -> (Q, L); P original rows per lane row.
    packed = [f.reshape(Q, L) for f in feats]

    # Tiny constant operands (VMEM-resident across grid steps).
    w_dtype = jnp.float32

    def blockdiag(w):
        wp = w.astype(w_dtype)
        if Hp != H:
            wp = jnp.pad(wp, ((0, Hp - H), (0, Hp - H)))
        return jnp.kron(jnp.eye(P, dtype=w_dtype), wp)            # (L, L)

    wu_blk = blockdiag(w_u)
    wi_blk = blockdiag(w_i)
    sel = (jnp.arange(L)[:, None] // Hp ==
           jnp.arange(selw)[None, :]).astype(w_dtype)             # (L, selw)

    # Tile over packed rows: big tiles (up to 2048 original rows) to amortize
    # per-step overhead, but at least two grid steps when possible so the
    # 'parallel' axis shards across both TensorCores on v7x.
    tile_q = min(512, max(8, _round_up(pl.cdiv(Q, 2), 8)))
    grid = (pl.cdiv(Q, tile_q),)

    feat_spec = pl.BlockSpec((tile_q, L), lambda i: (i, 0))
    w_spec = pl.BlockSpec((L, L), lambda i: (0, 0))
    sel_spec = pl.BlockSpec((L, selw), lambda i: (0, 0))
    b_spec = pl.BlockSpec(memory_space=pltpu.MemorySpace.SMEM)
    out_spec = pl.BlockSpec((tile_q, 10 * P), lambda i: (i, 0))

    bytes_feat = sum(int(f.size) * f.dtype.itemsize for f in packed)
    cost = pl.CostEstimate(
        flops=8 * Q * L * L + 10 * Q * L + 20 * Q * L * selw,
        transcendentals=0,
        bytes_accessed=bytes_feat + 2 * L * L * 4 + L * selw * 4 + 8
        + Q * 10 * P * 4,
    )

    out = pl.pallas_call(
        _discriminator_kernel,
        out_shape=jax.ShapeDtypeStruct((Q, 10 * P), jnp.float32),
        grid=grid,
        in_specs=[feat_spec] * 8 + [w_spec, w_spec, sel_spec, b_spec, b_spec],
        out_specs=out_spec,
        compiler_params=pltpu.CompilerParams(
            dimension_semantics=("parallel",),
            vmem_limit_bytes=32 * 1024 * 1024,
        ),
        cost_estimate=cost,
    )(*packed, wu_blk, wi_blk, sel, b_u, b_i)

    # out[r, k*P + g] = y_k[P*r + g].  Unscramble the small (40*N-byte) slab:
    # free reshapes plus one tiny XLA transpose (negligible vs. feature
    # traffic), strip row padding and flatten to the PyTorch (1, 10*N) layout.
    logits = (out.reshape(Q, 10, P)
                 .transpose(1, 0, 2)
                 .reshape(10, Q * P)[:, :N]
                 .reshape(1, 10 * N))
    return logits


def _xavier_uniform_bilinear(key, n_h):
    # PyTorch xavier_uniform_ on weight of shape (1, n_h, n_h):
    # fan_in = n_h * n_h, fan_out = 1 * n_h, bound = sqrt(6 / (fan_in + fan_out))
    fan_in = n_h * n_h
    fan_out = n_h
    bound = (6.0 / (fan_in + fan_out)) ** 0.5
    return jax.random.uniform(key, (n_h, n_h), jnp.float32, -bound, bound)


def _reference(inputs, w_u, b_u, w_i, b_i):
    up1, up2, un1, un2, ip1, ip2, in1, in2 = inputs

    def bilin(x1, x2, w, b):
        return jnp.sum((x1 @ w) * x2, axis=-1) + b[0]   # (N,)

    rows = [
        bilin(up1, up2, w_u, b_u), bilin(ip1, ip2, w_i, b_i),
        bilin(up1, un1, w_u, b_u), bilin(up1, un2, w_u, b_u),
        bilin(up2, un1, w_u, b_u), bilin(up2, un2, w_u, b_u),
        bilin(ip1, in1, w_i, b_i), bilin(ip1, in2, w_i, b_i),
        bilin(ip2, in1, w_i, b_i), bilin(ip2, in2, w_i, b_i),
    ]
    return jnp.concatenate([r[None, :] for r in rows], axis=1)   # (1, 10N)


def _run_case(N, n_h, seed):
    key = jax.random.PRNGKey(seed)
    keys = jax.random.split(key, 10)
    inputs = [jax.random.normal(keys[k], (N, n_h), jnp.float32) for k in range(8)]
    w_u = _xavier_uniform_bilinear(keys[8], n_h)   # f_u.weight squeezed from (1,H,H)
    w_i = _xavier_uniform_bilinear(keys[9], n_h)   # f_i.weight
    b_u = jnp.full((1,), 0.25, jnp.float32)        # nonzero to exercise bias path
    b_i = jnp.full((1,), -0.5, jnp.float32)

    logits = discriminator_forward(*inputs, w_u, b_u, w_i, b_i)
    jax.block_until_ready(logits)

    ref = _reference(inputs, w_u, b_u, w_i, b_i)
    assert logits.shape == (1, 10 * N), logits.shape
    assert jnp.allclose(logits, ref, atol=2e-4, rtol=1e-4), \
        float(jnp.max(jnp.abs(logits - ref)))


if __name__ == "__main__":
    # Small shape consistent with the module (exercises row padding, 1 step).
    _run_case(N=8, n_h=32, seed=0)
    # Larger N: no padding pass, two parallel grid steps with a ragged tail.
    _run_case(N=600, n_h=32, seed=0)
    print("KERNEL_OK")
</pallas_src>

<mosaic_0001>
module attributes {stable_mosaic.version = 11 : i64} {
  func.func @_discriminator_kernel(%arg0: i32, %arg1: memref<8x128xf32, #tpu.memory_space<vmem>>, %arg2: memref<8x128xf32, #tpu.memory_space<vmem>>, %arg3: memref<8x128xf32, #tpu.memory_space<vmem>>, %arg4: memref<8x128xf32, #tpu.memory_space<vmem>>, %arg5: memref<8x128xf32, #tpu.memory_space<vmem>>, %arg6: memref<8x128xf32, #tpu.memory_space<vmem>>, %arg7: memref<8x128xf32, #tpu.memory_space<vmem>>, %arg8: memref<8x128xf32, #tpu.memory_space<vmem>>, %arg9: memref<128x128xf32, #tpu.memory_space<vmem>>, %arg10: memref<128x128xf32, #tpu.memory_space<vmem>>, %arg11: memref<128x8xf32, #tpu.memory_space<vmem>>, %arg12: memref<1xf32, #tpu.memory_space<smem>>, %arg13: memref<1xf32, #tpu.memory_space<smem>>, %arg14: memref<8x40xf32, #tpu.memory_space<vmem>>) attributes {dimension_semantics = [#tpu.dimension_semantics<parallel>], iteration_bounds = array<i64: 1>, scalar_prefetch = 0 : i64, scratch_operands = 0 : i64, tpu.core_type = #tpu.core_type<tc>, window_params = [{transform_indices = @transform_0, window_bounds = array<i64: 8, 128>}, {transform_indices = @transform_1, window_bounds = array<i64: 8, 128>}, {transform_indices = @transform_2, window_bounds = array<i64: 8, 128>}, {transform_indices = @transform_3, window_bounds = array<i64: 8, 128>}, {transform_indices = @transform_4, window_bounds = array<i64: 8, 128>}, {transform_indices = @transform_5, window_bounds = array<i64: 8, 128>}, {transform_indices = @transform_6, window_bounds = array<i64: 8, 128>}, {transform_indices = @transform_7, window_bounds = array<i64: 8, 128>}, {pipeline_mode = #tpu.pipeline_mode<synchronous>, transform_indices = @transform_8, window_bounds = array<i64: 128, 128>}, {pipeline_mode = #tpu.pipeline_mode<synchronous>, transform_indices = @transform_9, window_bounds = array<i64: 128, 128>}, {pipeline_mode = #tpu.pipeline_mode<synchronous>, transform_indices = @transform_10, window_bounds = array<i64: 128, 8>}, {transform_indices = @transform_11, window_bounds = array<i64: 1>}, {transform_indices = @transform_12, window_bounds = array<i64: 1>}, {transform_indices = @transform_13, window_bounds = array<i64: 8, 40>}]} {
    %c0 = arith.constant 0 : index
    %c0_0 = arith.constant 0 : index
    %0 = vector.load %arg1[%c0, %c0_0] : memref<8x128xf32, #tpu.memory_space<vmem>>, vector<8x128xf32>
    %c0_1 = arith.constant 0 : index
    %c0_2 = arith.constant 0 : index
    %1 = vector.load %arg9[%c0_1, %c0_2] : memref<128x128xf32, #tpu.memory_space<vmem>>, vector<128x128xf32>
    %cst = arith.constant dense<0.000000e+00> : vector<8x128xf32>
    %2 = tpu.matmul %0, %1, %cst {dimension_numbers = #tpu.dot_dimension_numbers<[1], [0], [0], [1], [0, 0, 1, 1], [], []>} : vector<8x128xf32>, vector<128x128xf32>, vector<8x128xf32> -> vector<8x128xf32>
    %c0_3 = arith.constant 0 : index
    %c0_4 = arith.constant 0 : index
    %3 = vector.load %arg2[%c0_3, %c0_4] : memref<8x128xf32, #tpu.memory_space<vmem>>, vector<8x128xf32>
    %c0_5 = arith.constant 0 : index
    %c0_6 = arith.constant 0 : index
    %4 = vector.load %arg9[%c0_5, %c0_6] : memref<128x128xf32, #tpu.memory_space<vmem>>, vector<128x128xf32>
    %cst_7 = arith.constant dense<0.000000e+00> : vector<8x128xf32>
    %5 = tpu.matmul %3, %4, %cst_7 {dimension_numbers = #tpu.dot_dimension_numbers<[1], [0], [0], [1], [0, 0, 1, 1], [], []>} : vector<8x128xf32>, vector<128x128xf32>, vector<8x128xf32> -> vector<8x128xf32>
    %c0_8 = arith.constant 0 : index
    %c0_9 = arith.constant 0 : index
    %6 = vector.load %arg5[%c0_8, %c0_9] : memref<8x128xf32, #tpu.memory_space<vmem>>, vector<8x128xf32>
    %c0_10 = arith.constant 0 : index
    %c0_11 = arith.constant 0 : index
    %7 = vector.load %arg10[%c0_10, %c0_11] : memref<128x128xf32, #tpu.memory_space<vmem>>, vector<128x128xf32>
    %cst_12 = arith.constant dense<0.000000e+00> : vector<8x128xf32>
    %8 = tpu.matmul %6, %7, %cst_12 {dimension_numbers = #tpu.dot_dimension_numbers<[1], [0], [0], [1], [0, 0, 1, 1], [], []>} : vector<8x128xf32>, vector<128x128xf32>, vector<8x128xf32> -> vector<8x128xf32>
    %c0_13 = arith.constant 0 : index
    %c0_14 = arith.constant 0 : index
    %9 = vector.load %arg6[%c0_13, %c0_14] : memref<8x128xf32, #tpu.memory_space<vmem>>, vector<8x128xf32>
    %c0_15 = arith.constant 0 : index
    %c0_16 = arith.constant 0 : index
    %10 = vector.load %arg10[%c0_15, %c0_16] : memref<128x128xf32, #tpu.memory_space<vmem>>, vector<128x128xf32>
    %cst_17 = arith.constant dense<0.000000e+00> : vector<8x128xf32>
    %11 = tpu.matmul %9, %10, %cst_17 {dimension_numbers = #tpu.dot_dimension_numbers<[1], [0], [0], [1], [0, 0, 1, 1], [], []>} : vector<8x128xf32>, vector<128x128xf32>, vector<8x128xf32> -> vector<8x128xf32>
    %c0_18 = arith.constant 0 : index
    %c0_19 = arith.constant 0 : index
    %12 = vector.load %arg11[%c0_18, %c0_19] : memref<128x8xf32, #tpu.memory_space<vmem>>, vector<128x8xf32>
    %c0_20 = arith.constant 0 : index
    %13 = memref.load %arg12[%c0_20] : memref<1xf32, #tpu.memory_space<smem>>
    %c0_21 = arith.constant 0 : index
    %14 = memref.load %arg13[%c0_21] : memref<1xf32, #tpu.memory_space<smem>>
    %c0_22 = arith.constant 0 : index
    %c0_23 = arith.constant 0 : index
    %15 = vector.load %arg2[%c0_22, %c0_23] : memref<8x128xf32, #tpu.memory_space<vmem>>, vector<8x128xf32>
    %c0_24 = arith.constant 0 : index
    %c0_25 = arith.constant 0 : index
    %16 = vector.load %arg6[%c0_24, %c0_25] : memref<8x128xf32, #tpu.memory_space<vmem>>, vector<8x128xf32>
    %c0_26 = arith.constant 0 : index
    %c0_27 = arith.constant 0 : index
    %17 = vector.load %arg3[%c0_26, %c0_27] : memref<8x128xf32, #tpu.memory_space<vmem>>, vector<8x128xf32>
    %c0_28 = arith.constant 0 : index
    %c0_29 = arith.constant 0 : index
    %18 = vector.load %arg4[%c0_28, %c0_29] : memref<8x128xf32, #tpu.memory_space<vmem>>, vector<8x128xf32>
    %c0_30 = arith.constant 0 : index
    %c0_31 = arith.constant 0 : index
    %19 = vector.load %arg7[%c0_30, %c0_31] : memref<8x128xf32, #tpu.memory_space<vmem>>, vector<8x128xf32>
    %c0_32 = arith.constant 0 : index
    %c0_33 = arith.constant 0 : index
    %20 = vector.load %arg8[%c0_32, %c0_33] : memref<8x128xf32, #tpu.memory_space<vmem>>, vector<8x128xf32>
    %21 = arith.mulf %2, %15 : vector<8x128xf32>
    %cst_34 = arith.constant dense<0.000000e+00> : vector<8x8xf32>
    %22 = tpu.matmul %21, %12, %cst_34 {dimension_numbers = #tpu.dot_dimension_numbers<[1], [0], [0], [1], [0, 0, 1, 1], [], []>} : vector<8x128xf32>, vector<128x8xf32>, vector<8x8xf32> -> vector<8x8xf32>
    %23 = vector.extract_strided_slice %22 {offsets = [0, 0], sizes = [8, 4], strides = [1, 1]} : vector<8x8xf32> to vector<8x4xf32>
    %24 = vector.broadcast %13 : f32 to vector<8x4xf32>
    %25 = arith.addf %23, %24 : vector<8x4xf32>
    %c0_35 = arith.constant 0 : index
    %c0_36 = arith.constant 0 : index
    %26 = vector.load %arg14[%c0_35, %c0_36] : memref<8x40xf32, #tpu.memory_space<vmem>>, vector<8x4xf32>
    tpu.vector_store %arg14[%c0_35, %c0_36], %25 {strides = array<i32>} : memref<8x40xf32, #tpu.memory_space<vmem>>, vector<8x4xf32>,
    %27 = arith.mulf %8, %16 : vector<8x128xf32>
    %cst_37 = arith.constant dense<0.000000e+00> : vector<8x8xf32>
    %28 = tpu.matmul %27, %12, %cst_37 {dimension_numbers = #tpu.dot_dimension_numbers<[1], [0], [0], [1], [0, 0, 1, 1], [], []>} : vector<8x128xf32>, vector<128x8xf32>, vector<8x8xf32> -> vector<8x8xf32>
    %29 = vector.extract_strided_slice %28 {offsets = [0, 0], sizes = [8, 4], strides = [1, 1]} : vector<8x8xf32> to vector<8x4xf32>
    %30 = vector.broadcast %14 : f32 to vector<8x4xf32>
    %31 = arith.addf %29, %30 : vector<8x4xf32>
    %c0_38 = arith.constant 0 : index
    %c4 = arith.constant 4 : index
    %32 = vector.load %arg14[%c0_38, %c4] : memref<8x40xf32, #tpu.memory_space<vmem>>, vector<8x4xf32>
    tpu.vector_store %arg14[%c0_38, %c4], %31 {strides = array<i32>} : memref<8x40xf32, #tpu.memory_space<vmem>>, vector<8x4xf32>,
    %33 = arith.mulf %2, %17 : vector<8x128xf32>
    %cst_39 = arith.constant dense<0.000000e+00> : vector<8x8xf32>
    %34 = tpu.matmul %33, %12, %cst_39 {dimension_numbers = #tpu.dot_dimension_numbers<[1], [0], [0], [1], [0, 0, 1, 1], [], []>} : vector<8x128xf32>, vector<128x8xf32>, vector<8x8xf32> -> vector<8x8xf32>
    %35 = vector.extract_strided_slice %34 {offsets = [0, 0], sizes = [8, 4], strides = [1, 1]} : vector<8x8xf32> to vector<8x4xf32>
    %36 = vector.broadcast %13 : f32 to vector<8x4xf32>
    %37 = arith.addf %35, %36 : vector<8x4xf32>
    %c0_40 = arith.constant 0 : index
    %c8 = arith.constant 8 : index
    %38 = vector.load %arg14[%c0_40, %c8] : memref<8x40xf32, #tpu.memory_space<vmem>>, vector<8x4xf32>
    tpu.vector_store %arg14[%c0_40, %c8], %37 {strides = array<i32>} : memref<8x40xf32, #tpu.memory_space<vmem>>, vector<8x4xf32>,
    %39 = arith.mulf %2, %18 : vector<8x128xf32>
    %cst_41 = arith.constant dense<0.000000e+00> : vector<8x8xf32>
    %40 = tpu.matmul %39, %12, %cst_41 {dimension_numbers = #tpu.dot_dimension_numbers<[1], [0], [0], [1], [0, 0, 1, 1], [], []>} : vector<8x128xf32>, vector<128x8xf32>, vector<8x8xf32> -> vector<8x8xf32>
    %41 = vector.extract_strided_slice %40 {offsets = [0, 0], sizes = [8, 4], strides = [1, 1]} : vector<8x8xf32> to vector<8x4xf32>
    %42 = vector.broadcast %13 : f32 to vector<8x4xf32>
    %43 = arith.addf %41, %42 : vector<8x4xf32>
    %c0_42 = arith.constant 0 : index
    %c12 = arith.constant 12 : index
    %44 = vector.load %arg14[%c0_42, %c12] : memref<8x40xf32, #tpu.memory_space<vmem>>, vector<8x4xf32>
    tpu.vector_store %arg14[%c0_42, %c12], %43 {strides = array<i32>} : memref<8x40xf32, #tpu.memory_space<vmem>>, vector<8x4xf32>,
    %45 = arith.mulf %5, %17 : vector<8x128xf32>
    %cst_43 = arith.constant dense<0.000000e+00> : vector<8x8xf32>
    %46 = tpu.matmul %45, %12, %cst_43 {dimension_numbers = #tpu.dot_dimension_numbers<[1], [0], [0], [1], [0, 0, 1, 1], [], []>} : vector<8x128xf32>, vector<128x8xf32>, vector<8x8xf32> -> vector<8x8xf32>
    %47 = vector.extract_strided_slice %46 {offsets = [0, 0], sizes = [8, 4], strides = [1, 1]} : vector<8x8xf32> to vector<8x4xf32>
    %48 = vector.broadcast %13 : f32 to vector<8x4xf32>
    %49 = arith.addf %47, %48 : vector<8x4xf32>
    %c0_44 = arith.constant 0 : index
    %c16 = arith.constant 16 : index
    %50 = vector.load %arg14[%c0_44, %c16] : memref<8x40xf32, #tpu.memory_space<vmem>>, vector<8x4xf32>
    tpu.vector_store %arg14[%c0_44, %c16], %49 {strides = array<i32>} : memref<8x40xf32, #tpu.memory_space<vmem>>, vector<8x4xf32>,
    %51 = arith.mulf %5, %18 : vector<8x128xf32>
    %cst_45 = arith.constant dense<0.000000e+00> : vector<8x8xf32>
    %52 = tpu.matmul %51, %12, %cst_45 {dimension_numbers = #tpu.dot_dimension_numbers<[1], [0], [0], [1], [0, 0, 1, 1], [], []>} : vector<8x128xf32>, vector<128x8xf32>, vector<8x8xf32> -> vector<8x8xf32>
    %53 = vector.extract_strided_slice %52 {offsets = [0, 0], sizes = [8, 4], strides = [1, 1]} : vector<8x8xf32> to vector<8x4xf32>
    %54 = vector.broadcast %13 : f32 to vector<8x4xf32>
    %55 = arith.addf %53, %54 : vector<8x4xf32>
    %c0_46 = arith.constant 0 : index
    %c20 = arith.constant 20 : index
    %56 = vector.load %arg14[%c0_46, %c20] : memref<8x40xf32, #tpu.memory_space<vmem>>, vector<8x4xf32>
    tpu.vector_store %arg14[%c0_46, %c20], %55 {strides = array<i32>} : memref<8x40xf32, #tpu.memory_space<vmem>>, vector<8x4xf32>,
    %57 = arith.mulf %8, %19 : vector<8x128xf32>
    %cst_47 = arith.constant dense<0.000000e+00> : vector<8x8xf32>
    %58 = tpu.matmul %57, %12, %cst_47 {dimension_numbers = #tpu.dot_dimension_numbers<[1], [0], [0], [1], [0, 0, 1, 1], [], []>} : vector<8x128xf32>, vector<128x8xf32>, vector<8x8xf32> -> vector<8x8xf32>
    %59 = vector.extract_strided_slice %58 {offsets = [0, 0], sizes = [8, 4], strides = [1, 1]} : vector<8x8xf32> to vector<8x4xf32>
    %60 = vector.broadcast %14 : f32 to vector<8x4xf32>
    %61 = arith.addf %59, %60 : vector<8x4xf32>
    %c0_48 = arith.constant 0 : index
    %c24 = arith.constant 24 : index
    %62 = vector.load %arg14[%c0_48, %c24] : memref<8x40xf32, #tpu.memory_space<vmem>>, vector<8x4xf32>
    tpu.vector_store %arg14[%c0_48, %c24], %61 {strides = array<i32>} : memref<8x40xf32, #tpu.memory_space<vmem>>, vector<8x4xf32>,
    %63 = arith.mulf %8, %20 : vector<8x128xf32>
    %cst_49 = arith.constant dense<0.000000e+00> : vector<8x8xf32>
    %64 = tpu.matmul %63, %12, %cst_49 {dimension_numbers = #tpu.dot_dimension_numbers<[1], [0], [0], [1], [0, 0, 1, 1], [], []>} : vector<8x128xf32>, vector<128x8xf32>, vector<8x8xf32> -> vector<8x8xf32>
    %65 = vector.extract_strided_slice %64 {offsets = [0, 0], sizes = [8, 4], strides = [1, 1]} : vector<8x8xf32> to vector<8x4xf32>
    %66 = vector.broadcast %14 : f32 to vector<8x4xf32>
    %67 = arith.addf %65, %66 : vector<8x4xf32>
    %c0_50 = arith.constant 0 : index
    %c28 = arith.constant 28 : index
    %68 = vector.load %arg14[%c0_50, %c28] : memref<8x40xf32, #tpu.memory_space<vmem>>, vector<8x4xf32>
    tpu.vector_store %arg14[%c0_50, %c28], %67 {strides = array<i32>} : memref<8x40xf32, #tpu.memory_space<vmem>>, vector<8x4xf32>,
    %69 = arith.mulf %11, %19 : vector<8x128xf32>
    %cst_51 = arith.constant dense<0.000000e+00> : vector<8x8xf32>
    %70 = tpu.matmul %69, %12, %cst_51 {dimension_numbers = #tpu.dot_dimension_numbers<[1], [0], [0], [1], [0, 0, 1, 1], [], []>} : vector<8x128xf32>, vector<128x8xf32>, vector<8x8xf32> -> vector<8x8xf32>
    %71 = vector.extract_strided_slice %70 {offsets = [0, 0], sizes = [8, 4], strides = [1, 1]} : vector<8x8xf32> to vector<8x4xf32>
    %72 = vector.broadcast %14 : f32 to vector<8x4xf32>
    %73 = arith.addf %71, %72 : vector<8x4xf32>
    %c0_52 = arith.constant 0 : index
    %c32 = arith.constant 32 : index
    %74 = vector.load %arg14[%c0_52, %c32] : memref<8x40xf32, #tpu.memory_space<vmem>>, vector<8x4xf32>
    tpu.vector_store %arg14[%c0_52, %c32], %73 {strides = array<i32>} : memref<8x40xf32, #tpu.memory_space<vmem>>, vector<8x4xf32>,
    %75 = arith.mulf %11, %20 : vector<8x128xf32>
    %cst_53 = arith.constant dense<0.000000e+00> : vector<8x8xf32>
    %76 = tpu.matmul %75, %12, %cst_53 {dimension_numbers = #tpu.dot_dimension_numbers<[1], [0], [0], [1], [0, 0, 1, 1], [], []>} : vector<8x128xf32>, vector<128x8xf32>, vector<8x8xf32> -> vector<8x8xf32>
    %77 = vector.extract_strided_slice %76 {offsets = [0, 0], sizes = [8, 4], strides = [1, 1]} : vector<8x8xf32> to vector<8x4xf32>
    %78 = vector.broadcast %14 : f32 to vector<8x4xf32>
    %79 = arith.addf %77, %78 : vector<8x4xf32>
    %c0_54 = arith.constant 0 : index
    %c36 = arith.constant 36 : index
    %80 = vector.load %arg14[%c0_54, %c36] : memref<8x40xf32, #tpu.memory_space<vmem>>, vector<8x4xf32>
    tpu.vector_store %arg14[%c0_54, %c36], %79 {strides = array<i32>} : memref<8x40xf32, #tpu.memory_space<vmem>>, vector<8x4xf32>,
    return
  }
  func.func @transform_0(%arg0: i32) -> (i32, i32) {
    %c0_i32 = arith.constant 0 : i32
    %c0_i32_0 = arith.constant 0 : i32
    return %arg0, %c0_i32 : i32, i32
  }
  func.func @transform_1(%arg0: i32) -> (i32, i32) {
    %c0_i32 = arith.constant 0 : i32
    %c0_i32_0 = arith.constant 0 : i32
    return %arg0, %c0_i32 : i32, i32
  }
  func.func @transform_2(%arg0: i32) -> (i32, i32) {
    %c0_i32 = arith.constant 0 : i32
    %c0_i32_0 = arith.constant 0 : i32
    return %arg0, %c0_i32 : i32, i32
  }
  func.func @transform_3(%arg0: i32) -> (i32, i32) {
    %c0_i32 = arith.constant 0 : i32
    %c0_i32_0 = arith.constant 0 : i32
    return %arg0, %c0_i32 : i32, i32
  }
  func.func @transform_4(%arg0: i32) -> (i32, i32) {
    %c0_i32 = arith.constant 0 : i32
    %c0_i32_0 = arith.constant 0 : i32
    return %arg0, %c0_i32 : i32, i32
  }
  func.func @transform_5(%arg0: i32) -> (i32, i32) {
    %c0_i32 = arith.constant 0 : i32
    %c0_i32_0 = arith.constant 0 : i32
    return %arg0, %c0_i32 : i32, i32
  }
  func.func @transform_6(%arg0: i32) -> (i32, i32) {
    %c0_i32 = arith.constant 0 : i32
    %c0_i32_0 = arith.constant 0 : i32
    return %arg0, %c0_i32 : i32, i32
  }
  func.func @transform_7(%arg0: i32) -> (i32, i32) {
    %c0_i32 = arith.constant 0 : i32
    %c0_i32_0 = arith.constant 0 : i32
    return %arg0, %c0_i32 : i32, i32
  }
  func.func @transform_8(%arg0: i32) -> (i32, i32) {
    %c0_i32 = arith.constant 0 : i32
    %c0_i32_0 = arith.constant 0 : i32
    %c0_i32_1 = arith.constant 0 : i32
    return %c0_i32, %c0_i32_0 : i32, i32
  }
  func.func @transform_9(%arg0: i32) -> (i32, i32) {
    %c0_i32 = arith.constant 0 : i32
    %c0_i32_0 = arith.constant 0 : i32
    %c0_i32_1 = arith.constant 0 : i32
    return %c0_i32, %c0_i32_0 : i32, i32
  }
  func.func @transform_10(%arg0: i32) -> (i32, i32) {
    %c0_i32 = arith.constant 0 : i32
    %c0_i32_0 = arith.constant 0 : i32
    %c0_i32_1 = arith.constant 0 : i32
    return %c0_i32, %c0_i32_0 : i32, i32
  }
  func.func @transform_11(%arg0: i32) -> i32 {
    %c0_i32 = arith.constant 0 : i32
    %c0_i32_0 = arith.constant 0 : i32
    return %c0_i32 : i32
  }
  func.func @transform_12(%arg0: i32) -> i32 {
    %c0_i32 = arith.constant 0 : i32
    %c0_i32_0 = arith.constant 0 : i32
    return %c0_i32 : i32
  }
  func.func @transform_13(%arg0: i32) -> (i32, i32) {
    %c0_i32 = arith.constant 0 : i32
    %c0_i32_0 = arith.constant 0 : i32
    return %arg0, %c0_i32 : i32, i32
  }
}

</mosaic_0001>

<bundles_post_ra>
// kernel: tpu_custom_call.1
= control target key start
LH: loop header
LB: loop body
LE: loop exit
PB: predicated region body
PF: predicated region fallthrough
CT: control target
= control target key end

     0   :  { %20 = vsyncpa [#allocation5], 0  ;;  %s2965_s0 = inlined_call_operand.vmem [shape: f32[8,128], index: 0, kind: input, shape index: {}]   ;;  %s2966_s1 = inlined_call_operand.vmem [shape: f32[8,128], index: 1, kind: input, shape index: {}]   ;;  %s2967_s2 = inlined_call_operand.vmem [shape: f32[8,128], index: 2, kind: input, shape index: {}]   ;;  %s2968_s3 = inlined_call_operand.vmem [shape: f32[8,128], index: 3, kind: input, shape index: {}]   ;;  %s2969_s4 = inlined_call_operand.vmem [shape: f32[8,128], index: 4, kind: input, shape index: {}]   ;;  %s2970_s5 = inlined_call_operand.hbm [shape: f32[8,128], index: 5, kind: input, shape index: {}]   ;;  %s2971_s6 = inlined_call_operand.hbm [shape: f32[8,128], index: 6, kind: input, shape index: {}]   ;;  %s2972_s7 = inlined_call_operand.hbm [shape: f32[8,128], index: 7, kind: input, shape index: {}]   ;;  %s2973_s8 = inlined_call_operand.vmem [shape: f32[128,128], index: 8, kind: input, shape index: {}]   ;;  %s2974_s9 = inlined_call_operand.hbm [shape: f32[128,128], index: 9, kind: input, shape index: {}]   ;;  %s2975_s10 = inlined_call_operand.vmem [shape: f32[128,8], index: 10, kind: input, shape index: {}]   ;;  %s2976_s11 = inlined_call_operand.<no memory space> [shape: f32[1], index: 11, kind: input, shape index: {}]   ;;  %s2977_s12 = inlined_call_operand.<no memory space> [shape: f32[1], index: 12, kind: input, shape index: {}]   ;;  %s2978_s13 = inlined_call_operand.hbm [shape: f32[8,40], index: 13, kind: output, shape index: {}]  }
   0x1   :  { %21 = vsyncpa [#allocation8], 0 }
   0x2   :  { %22 = vsyncpa [#allocation11], 0 }
   0x3   :  { %23 = vsyncpa [#allocation6], 0  ;;  %s2429_s25 = smov [#allocation7]   ;;  %s2430_s27 = smov [#allocation4]  }
   0x4   :  { %s50_s26 = sshll.u32 %s2429_s25, 4  ;;  %s40_s28 = sshll.u32 %s2430_s27, 4  ;;  %s51_s26 = int_to_ptr.vmem [resolvable:$true] %s50_s26  ;;  %s41_s28 = int_to_ptr.vmem [resolvable:$true] %s40_s28 }
   0x5   :  { %s2311_s14 = scalar_lea.hbm %s2971_s6, 128 }
   0x6   :  { %p2312_p0 = scmp.ne.s32.totalorder %s2971_s6, %s2311_s14  ;;  %p2315_p1 = scmp.lt.u32.totalorder %s2311_s14, %s2971_s6 }
   0x8   :  { %p2317_p2 = pnand %p2315_p1, %p2312_p0 }
   0xa   :  { %2320 = shalt.err (!%p2317_p2)
}
   0xb   :  { %s2321_s19 = scalar_lea.vmem %s51_s26, 128  ;;  %p2326_p4 = scmp.lt.s32.totalorder %s51_s26, %s51_s26 }
   0xc   :  { %p2322_p3 = scmp.ne.s32.totalorder %s51_s26, %s2321_s19  ;;  %p2327_p5 = scmp.lt.s32.totalorder %s2321_s19, %s2321_s19 }
   0xe   :  { %p2328_p6 = por %p2327_p5, %p2326_p4 }
  0x10   :  { %p2329_p7 = pnand %p2328_p6, %p2322_p3 }
  0x12   :  { %2332 = shalt.err (!%p2329_p7)
}
  0x13   :  { %53 = dma.hbm_to_vmem [thread:$0]  %s2971_s6, 128, %s51_s26, [#allocation8]  }
  0x14   :  { %s2333_s24 = scalar_lea.hbm %s2970_s5, 128 }
  0x15   :  { %p2334_p8 = scmp.ne.s32.totalorder %s2970_s5, %s2333_s24  ;;  %p2337_p9 = scmp.lt.u32.totalorder %s2333_s24, %s2970_s5 }
  0x17   :  { %p2339_p10 = pnand %p2337_p9, %p2334_p8 }
  0x19   :  { %2342 = shalt.err (!%p2339_p10)
}
  0x1a   :  { %s2343_s14 = scalar_lea.vmem %s41_s28, 128  ;;  %p2348_p12 = scmp.lt.s32.totalorder %s41_s28, %s41_s28 }
  0x1b   :  { %p2344_p11 = scmp.ne.s32.totalorder %s41_s28, %s2343_s14  ;;  %p2349_p13 = scmp.lt.s32.totalorder %s2343_s14, %s2343_s14 }
  0x1d   :  { %p2350_p0 = por %p2349_p13, %p2348_p12 }
  0x1f   :  { %p2351_p1 = pnand %p2350_p0, %p2344_p11 }
  0x21   :  { %2354 = shalt.err (!%p2351_p1)
}
  0x22   :  { %43 = dma.hbm_to_vmem [thread:$0]  %s2970_s5, 128, %s41_s28, [#allocation5]  }
  0x23   :  { %s2431_s15 = smov [#allocation9]   ;;  %s2432_s17 = smov [#allocation10]  }
  0x24   :  { %s60_s16 = sshll.u32 %s2431_s15, 4  ;;  %s71_s18 = sshll.u32 %s2432_s17, 4  ;;  %s61_s16 = int_to_ptr.vmem [resolvable:$true] %s60_s16  ;;  %s2541_s18 = int_to_ptr.vmem [resolvable:$true] %s71_s18 }
  0x25   :  { %s2355_s21 = scalar_lea.hbm %s2972_s7, 128 }
  0x26   :  { %p2356_p2 = scmp.ne.s32.totalorder %s2972_s7, %s2355_s21  ;;  %p2359_p3 = scmp.lt.u32.totalorder %s2355_s21, %s2972_s7 }
  0x28   :  { %p2361_p4 = pnand %p2359_p3, %p2356_p2 }
  0x2a   :  { %2364 = shalt.err (!%p2361_p4)
}
  0x2b   :  { %s2365_s5 = scalar_lea.vmem %s61_s16, 128  ;;  %p2370_p6 = scmp.lt.s32.totalorder %s61_s16, %s61_s16 }
  0x2c   :  { %p2366_p5 = scmp.ne.s32.totalorder %s61_s16, %s2365_s5  ;;  %p2371_p7 = scmp.lt.s32.totalorder %s2365_s5, %s2365_s5 }
  0x2e   :  { %p2372_p8 = por %p2371_p7, %p2370_p6 }
  0x30   :  { %p2373_p9 = pnand %p2372_p8, %p2366_p5 }
  0x32   :  { %2376 = shalt.err (!%p2373_p9)
}
  0x33   :  { %63 = dma.hbm_to_vmem [thread:$0]  %s2972_s7, 128, %s61_s16, [#allocation8]  }
  0x34   :  { %s2377_s14 = scalar_lea.hbm %s2974_s9, 2048 }
  0x35   :  { %p2378_p10 = scmp.ne.s32.totalorder %s2974_s9, %s2377_s14  ;;  %p2381_p11 = scmp.lt.u32.totalorder %s2377_s14, %s2974_s9 }
  0x37   :  { %p2383_p12 = pnand %p2381_p11, %p2378_p10 }
  0x39   :  { %2386 = shalt.err (!%p2383_p12)
}
  0x3a   :  { %s2387_s19 = scalar_lea.vmem %s2541_s18, 2048  ;;  %p2392_p0 = scmp.lt.s32.totalorder %s2541_s18, %s2541_s18 }
  0x3b   :  { %p2388_p13 = scmp.ne.s32.totalorder %s2541_s18, %s2387_s19  ;;  %p2393_p1 = scmp.lt.s32.totalorder %s2387_s19, %s2387_s19 }
  0x3d   :  { %p2394_p2 = por %p2393_p1, %p2392_p0 }
  0x3f   :  { %p2395_p3 = pnand %p2394_p2, %p2388_p13 }
  0x41   :  { %2398 = shalt.err (!%p2395_p3)
}
  0x42   :  { %s2433_s7 = smov 128   ;;  %s2434_s16 = smov 8  }
  0x43   :  { %77 = dma.hbm_to_vmem [thread:$0]  %s2974_s9, 2048, %s2541_s18, [#allocation11], %s2433_s7, %s2433_s7, %s2434_s16  }
  0x44   :  { %2421 = dma.done.wait [#allocation5], 128  }
  0x45   :  { %2422 = vsyncadd [#allocation5], 4294967168 }
  0x46   :  { %2423 = dma.done.wait [#allocation8], 256  }
  0x47   :  { %2424 = vsyncadd [#allocation8], 4294967040 }
  0x48   :  { %2425 = dma.done.wait [#allocation11], 2048  }
  0x49   :  { %2426 = vsyncadd [#allocation11], 4294965248  ;;  %v2435_v0 = vmov 0.0|0.0   ;;  %vm2436_vm0 = vmmov 0   ;;  %v2437_v1 = vmov 0.0   ;;  %v97_v2 = vld [vmem:[%s2973_s8] sm:$0xff] }
  0x4a   :  { %1957 = vmatprep.subr.bf16.mxu0 %v2435_v0  ;;  %1499 = vmatprep.mubr.msk.f32.mxu0 %vm2436_vm0, %v2437_v1  ;;  %v98_v3 = vld [vmem:[%s2973_s8 + $0x8] sm:$0xff]  ;;  %v99_v4 = vld [vmem:[%s2973_s8 + $0x10] sm:$0xff]  ;;  %v100_v6 = vld [vmem:[%s2973_s8 + $0x18] sm:$0xff]  ;;  %vm507_vm1 = vcmask 31744   ;;  %s2438_s28 = smov 4   ;;  %s2440_s27 = smov 16  }
  0x4b   :  { %1981 = vmatprep.subr.bf16.mxu1 %v2435_v0  ;;  %1534 = vmatprep.mubr.msk.f32.mxu1 %vm2436_vm0, %v2437_v1  ;;  %v1958_v5 = vpack.c.bf16 %v98_v3, %v97_v2  ;;  %v1961_v7 = vpack.c.bf16 %v100_v6, %v99_v4  ;;  %v101_v8 = vld [vmem:[%s2973_s8 + $0x20] sm:$0xff]  ;;  %v102_v9 = vld [vmem:[%s2973_s8 + $0x28] sm:$0xff]  ;;  %v103_v11 = vld [vmem:[%s2973_s8 + $0x30] sm:$0xff]  ;;  %s2443_s29 = smov 28   ;;  %s2444_s30 = smov 32   ;;  %vm586_vm2 = vcmask 64544  }
  0x4c   :  { %v1964_v10 = vpack.c.bf16 %v102_v9, %v101_v8  ;;  %v104_v12 = vld [vmem:[%s2973_s8 + $0x38] sm:$0xff]  ;;  %v105_v14 = vld [vmem:[%s2973_s8 + $0x40] sm:$0xff]  ;;  %v106_v15 = vld [vmem:[%s2973_s8 + $0x48] sm:$0xff]  ;;  %vm664_vm3 = vcmask 97344   ;;  %s2445_s14 = smov 36   ;;  %vm742_vm4 = vcmask 130144  }
  0x4d   :  { %1959 = vmatpush3.bf16.msra.mxu0 %v1958_v5  ;;  %1983 = vmatpush3.bf16.msra.mxu1 %v1958_v5  ;;  %v1967_v13 = vpack.c.bf16 %v104_v12, %v103_v11  ;;  %v1970_v16 = vpack.c.bf16 %v106_v15, %v105_v14  ;;  %v107_v17 = vld [vmem:[%s2973_s8 + $0x50] sm:$0xff]  ;;  %v108_v18 = vld [vmem:[%s2973_s8 + $0x58] sm:$0xff]  ;;  %v109_v20 = vld [vmem:[%s2973_s8 + $0x60] sm:$0xff]  ;;  %vm820_vm5 = vcmask 162944   ;;  %vm898_vm6 = vcmask 195744   ;;  %s2446_s6 = smov [#allocation12]  }
  0x4e   :  { %1960 = vmatprep.subr.bf16.mxu0 %v2435_v0  ;;  %1984 = vmatprep.subr.bf16.mxu1 %v2435_v0  ;;  %v1973_v19 = vpack.c.bf16 %v108_v18, %v107_v17  ;;  %v110_v21 = vld [vmem:[%s2973_s8 + $0x68] sm:$0xff]  ;;  %v111_v23 = vld [vmem:[%s2973_s8 + $0x70] sm:$0xff]  ;;  %v112_v24 = vld [vmem:[%s2973_s8 + $0x78] sm:$0xff]  ;;  %vm976_vm7 = vcmask 228544   ;;  %vm1054_vm8 = vcmask 261344   ;;  %vm1132_vm9 = vcmask 294144  }
  0x4f   :  { %v1976_v22 = vpack.c.bf16 %v110_v21, %v109_v20  ;;  %v1979_v25 = vpack.c.bf16 %v112_v24, %v111_v23  ;;  %v255_v26 = vld [vmem:[#allocation10] sm:$0xff]  ;;  %v256_v27 = vld [vmem:[#allocation10 + $0x8] sm:$0xff]  ;;  %v257_v31 = vld [vmem:[#allocation10 + $0x10] sm:$0xff]  ;;  %s1218_s26 = sshll.u32 %s2446_s6, 4  ;;  %vm1210_vm10 = vcmask 326944   ;;  %s1219_s26 = int_to_ptr.vmem [resolvable:$true] %s1218_s26 }
  0x50   :  { %v96_v28 = vld [vmem:[%s2965_s0] sm:$0xff]  ;;  %v2006_v29 = vpack.c.bf16 %v256_v27, %v255_v26  ;;  %v258_v32 = vld [vmem:[#allocation10 + $0x18] sm:$0xff]  ;;  %v259_v34 = vld [vmem:[#allocation10 + $0x20] sm:$0xff]  ;;  %s2399_s15 = scalar_lea.vmem %s1219_s26, 128  ;;  %p2404_p5 = scmp.lt.s32.totalorder %s1219_s26, %s1219_s26 }
  0x51   :  { %1962 = vmatpush3.bf16.msra.mxu0 %v1961_v7  ;;  %1986 = vmatpush3.bf16.msra.mxu1 %v1961_v7  ;;  %v2647_v30 = vld [vmem:[%s2966_s1] sm:$0xff]  ;;  %v2009_v33 = vpack.c.bf16 %v258_v32, %v257_v31  ;;  %v261_v37 = vld [vmem:[#allocation10 + $0x30] sm:$0xff]  ;;  %v262_v38 = vld [vmem:[#allocation10 + $0x38] sm:$0xff]  ;;  %p2400_p4 = scmp.ne.s32.totalorder %s1219_s26, %s2399_s15  ;;  %p2405_p6 = scmp.lt.s32.totalorder %s2399_s15, %s2399_s15 }
  0x52   :  { %1963 = vmatprep.subr.bf16.mxu0 %v2435_v0  ;;  %1987 = vmatprep.subr.bf16.mxu1 %v2435_v0  ;;  %v260_v35 = vld [vmem:[#allocation10 + $0x28] sm:$0xff]  ;;  %v2015_v39 = vpack.c.bf16 %v262_v38, %v261_v37  ;;  %v263_v40 = vld [vmem:[#allocation10 + $0x40] sm:$0xff]  ;;  %v265_v43 = vld [vmem:[#allocation10 + $0x50] sm:$0xff]  ;;  %v505_v37 = vstv %s2976_s11  ;;  %s2439_s11 = smov 12  }
  0x53   :  { %v2012_v36 = vpack.c.bf16 %v260_v35, %v259_v34  ;;  %v264_v41 = vld [vmem:[#allocation10 + $0x48] sm:$0xff]  ;;  %v266_v44 = vld [vmem:[#allocation10 + $0x58] sm:$0xff]  ;;  %v267_v46 = vld [vmem:[#allocation10 + $0x60] sm:$0xff]  ;;  %p2406_p7 = por %p2405_p6, %p2404_p5 }
  0x54   :  { %v2018_v42 = vpack.c.bf16 %v264_v41, %v263_v40  ;;  %v2021_v45 = vpack.c.bf16 %v266_v44, %v265_v43  ;;  %v268_v47 = vld [vmem:[#allocation10 + $0x68] sm:$0xff]  ;;  %v269_v49 = vld [vmem:[#allocation10 + $0x70] sm:$0xff]  ;;  %v270_v50 = vld [vmem:[#allocation10 + $0x78] sm:$0xff] }
  0x55   :  { %1965 = vmatpush3.bf16.msra.mxu0 %v1964_v10  ;;  %1989 = vmatpush3.bf16.msra.mxu1 %v1964_v10  ;;  %v2024_v48 = vpack.c.bf16 %v268_v47, %v267_v46  ;;  %v2027_v51 = vpack.c.bf16 %v270_v50, %v269_v49  ;;  %v412_v52 = vld [vmem:[%s2975_s10] sm:$0xff]  ;;  %v413_v53 = vld [vmem:[%s2975_s10 + $0x8] sm:$0xff]  ;;  %v414_v57 = vld [vmem:[%s2975_s10 + $0x10] sm:$0xff]  ;;  %p2407_p8 = pnand %p2406_p7, %p2400_p4 }
  0x56   :  { %1966 = vmatprep.subr.bf16.mxu0 %v2435_v0  ;;  %1990 = vmatprep.subr.bf16.mxu1 %v2435_v0  ;;  %v254_v54 = vld [vmem:[%s2969_s4] sm:$0xff]  ;;  %v2679_v55 = vpack.c.bf16 %v413_v53, %v412_v52  ;;  %v415_v58 = vld [vmem:[%s2975_s10 + $0x18] sm:$0xff]  ;;  %v417_v61 = vld [vmem:[%s2975_s10 + $0x28] sm:$0xff] }
  0x57   :  { %v2681_v56 = vld [vmem:[#allocation4] sm:$0xff]  ;;  %v2693_v59 = vpack.c.bf16 %v415_v58, %v414_v57  ;;  %v418_v63 = vld [vmem:[%s2975_s10 + $0x30] sm:$0xff]  ;;  %v419_v2 = vld [vmem:[%s2975_s10 + $0x38] sm:$0xff] }
  0x58   :  { %v416_v60 = vld [vmem:[%s2975_s10 + $0x20] sm:$0xff]  ;;  %v2721_v3 = vpack.c.bf16 %v419_v2, %v418_v63  ;;  %v421_v5 = vld [vmem:[%s2975_s10 + $0x48] sm:$0xff]  ;;  %v422_v7 = vld [vmem:[%s2975_s10 + $0x50] sm:$0xff] }
  0x59   :  { %1968 = vmatpush3.bf16.msra.mxu0 %v1967_v13  ;;  %1992 = vmatpush3.bf16.msra.mxu1 %v1967_v13  ;;  %v2709_v62 = vpack.c.bf16 %v417_v61, %v416_v60  ;;  %v420_v4 = vld [vmem:[%s2975_s10 + $0x40] sm:$0xff]  ;;  %v423_v8 = vld [vmem:[%s2975_s10 + $0x58] sm:$0xff]  ;;  %v425_v11 = vld [vmem:[%s2975_s10 + $0x68] sm:$0xff] }
  0x5a   :  { %1969 = vmatprep.subr.bf16.mxu0 %v2435_v0  ;;  %1993 = vmatprep.subr.bf16.mxu1 %v2435_v0  ;;  %v2733_v6 = vpack.c.bf16 %v421_v5, %v420_v4  ;;  %v2745_v9 = vpack.c.bf16 %v423_v8, %v422_v7  ;;  %v424_v10 = vld [vmem:[%s2975_s10 + $0x60] sm:$0xff]  ;;  %v426_v13 = vld [vmem:[%s2975_s10 + $0x70] sm:$0xff]  ;;  %v427_v14 = vld [vmem:[%s2975_s10 + $0x78] sm:$0xff] }
  0x5b   :  { %v2757_v12 = vpack.c.bf16 %v425_v11, %v424_v10  ;;  %v2769_v15 = vpack.c.bf16 %v427_v14, %v426_v13  ;;  %v430_v21 = vld [vmem:[%s2967_s2] sm:$0xff]  ;;  %v432_v31 = vld [vmem:[#allocation7] sm:$0xff]  ;;  %v433_v34 = vld [vmem:[#allocation9] sm:$0xff] }
  0x5d   :  { %1971 = vmatpush3.bf16.msra.mxu0 %v1970_v16  ;;  %1995 = vmatpush3.bf16.msra.mxu1 %v1970_v16 }
  0x5e   :  { %1972 = vmatprep.subr.bf16.mxu0 %v2435_v0  ;;  %1996 = vmatprep.subr.bf16.mxu1 %v2435_v0 }
  0x61   :  { %1974 = vmatpush3.bf16.msra.mxu0 %v1973_v19  ;;  %1998 = vmatpush3.bf16.msra.mxu1 %v1973_v19 }
  0x62   :  { %1975 = vmatprep.subr.bf16.mxu0 %v2435_v0  ;;  %1999 = vmatprep.subr.bf16.mxu1 %v2435_v0 }
  0x65   :  { %1977 = vmatpush3.bf16.msra.mxu0 %v1976_v22  ;;  %2001 = vmatpush3.bf16.msra.mxu1 %v1976_v22 }
  0x66   :  { %1978 = vmatprep.subr.bf16.mxu0 %v2435_v0  ;;  %2002 = vmatprep.subr.bf16.mxu1 %v2435_v0 }
  0x69   :  { %1980 = vmatpush3.bf16.msra.mxu0 %v1979_v25  ;;  %2004 = vmatpush3.bf16.msra.mxu1 %v1979_v25 }
  0x6a   :  { %2005 = vmatprep.subr.bf16.mxu0 %v2435_v0  ;;  %2029 = vmatprep.subr.bf16.mxu1 %v2435_v0 }
  0x6c   :  { %1500 = vmatmul.mubr.f32.vlgmr.msra.gmra.mrb[0].mxu0 %v96_v28  ;;  %1535 = vmatmul.mubr.f32.vlgmr.msra.gmra.mrb[0].mxu1 %v2647_v30  ;;  %v431_v28 = vld [vmem:[%s2968_s3] sm:$0xff] }
  0x6d   :  { %2007 = vmatpush3.bf16.msra.mxu0 %v2006_v29  ;;  %1569 = vmatprep.mubr.msk.f32.mxu0 %vm2436_vm0, %v2437_v1 }
  0x6e   :  { %2008 = vmatprep.subr.bf16.mxu0 %v2435_v0  ;;  %2031 = vmatpush3.bf16.msra.mxu1 %v2006_v29 }
  0x6f   :  { %2032 = vmatprep.subr.bf16.mxu1 %v2435_v0  ;;  %1604 = vmatprep.mubr.msk.f32.mxu1 %vm2436_vm0, %v2437_v1 }
  0x71   :  { %2010 = vmatpush3.bf16.msra.mxu0 %v2009_v33 }
  0x72   :  { %2011 = vmatprep.subr.bf16.mxu0 %v2435_v0  ;;  %2034 = vmatpush3.bf16.msra.mxu1 %v2009_v33 }
  0x73   :  { %2035 = vmatprep.subr.bf16.mxu1 %v2435_v0 }
  0x75   :  { %2013 = vmatpush3.bf16.msra.mxu0 %v2012_v36 }
  0x76   :  { %2014 = vmatprep.subr.bf16.mxu0 %v2435_v0  ;;  %2037 = vmatpush3.bf16.msra.mxu1 %v2012_v36 }
  0x77   :  { %2038 = vmatprep.subr.bf16.mxu1 %v2435_v0 }
  0x79   :  { %2016 = vmatpush3.bf16.msra.mxu0 %v2015_v39 }
  0x7a   :  { %2017 = vmatprep.subr.bf16.mxu0 %v2435_v0  ;;  %2040 = vmatpush3.bf16.msra.mxu1 %v2015_v39 }
  0x7b   :  { %2041 = vmatprep.subr.bf16.mxu1 %v2435_v0 }
  0x7d   :  { %2019 = vmatpush3.bf16.msra.mxu0 %v2018_v42 }
  0x7e   :  { %2020 = vmatprep.subr.bf16.mxu0 %v2435_v0  ;;  %2043 = vmatpush3.bf16.msra.mxu1 %v2018_v42 }
  0x7f   :  { %2044 = vmatprep.subr.bf16.mxu1 %v2435_v0 }
  0x81   :  { %2022 = vmatpush3.bf16.msra.mxu0 %v2021_v45 }
  0x82   :  { %2023 = vmatprep.subr.bf16.mxu0 %v2435_v0  ;;  %2046 = vmatpush3.bf16.msra.mxu1 %v2021_v45 }
  0x83   :  { %2047 = vmatprep.subr.bf16.mxu1 %v2435_v0 }
  0x85   :  { %2025 = vmatpush3.bf16.msra.mxu0 %v2024_v48 }
  0x86   :  { %2026 = vmatprep.subr.bf16.mxu0 %v2435_v0  ;;  %2049 = vmatpush3.bf16.msra.mxu1 %v2024_v48 }
  0x87   :  { %2050 = vmatprep.subr.bf16.mxu1 %v2435_v0 }
  0x89   :  { %2028 = vmatpush3.bf16.msra.mxu0 %v2027_v51 }
  0x8a   :  { %2052 = vmatpush3.bf16.msra.mxu1 %v2027_v51  ;;  %2053 = vmatprep.subr.bf16.mxu0 %v2435_v0 }
  0x8b   :  { %2077 = vmatprep.subr.bf16.mxu1 %v2435_v0 }
  0x8c   :  { %1570 = vmatmul.mubr.f32.vlgmr.msra.gmra.mrb[2].mxu0 %v254_v54 }
  0x8d   :  { %1605 = vmatmul.mubr.f32.vlgmr.msra.gmra.mrb[2].mxu1 %v2681_v56  ;;  %2055 = vmatpush3.bf16.msra.mxu0 %v2679_v55 }
  0x8e   :  { %2056 = vmatprep.subr.bf16.mxu0 %v2435_v0  ;;  %1639 = vmatprep.mubr.msk.f32.mxu0 %vm2436_vm0, %v2437_v1 }
  0x8f   :  { %2079 = vmatpush3.bf16.msra.mxu1 %v2679_v55  ;;  %1674 = vmatprep.mubr.msk.f32.mxu1 %vm2436_vm0, %v2437_v1 }
  0x90   :  { %2080 = vmatprep.subr.bf16.mxu1 %v2435_v0 }
  0x91   :  { %2058 = vmatpush3.bf16.msra.mxu0 %v2693_v59 }
  0x92   :  { %2059 = vmatprep.subr.bf16.mxu0 %v2435_v0 }
  0x93   :  { %2082 = vmatpush3.bf16.msra.mxu1 %v2693_v59 }
  0x94   :  { %2083 = vmatprep.subr.bf16.mxu1 %v2435_v0 }
  0x95   :  { %2061 = vmatpush3.bf16.msra.mxu0 %v2709_v62 }
  0x96   :  { %2062 = vmatprep.subr.bf16.mxu0 %v2435_v0 }
  0x97   :  { %2085 = vmatpush3.bf16.msra.mxu1 %v2709_v62 }
  0x98   :  { %2086 = vmatprep.subr.bf16.mxu1 %v2435_v0 }
  0x99   :  { %2064 = vmatpush3.bf16.msra.mxu0 %v2721_v3 }
  0x9a   :  { %2065 = vmatprep.subr.bf16.mxu0 %v2435_v0 }
  0x9b   :  { %2088 = vmatpush3.bf16.msra.mxu1 %v2721_v3 }
  0x9c   :  { %2089 = vmatprep.subr.bf16.mxu1 %v2435_v0 }
  0x9d   :  { %2067 = vmatpush3.bf16.msra.mxu0 %v2733_v6 }
  0x9e   :  { %2068 = vmatprep.subr.bf16.mxu0 %v2435_v0 }
  0x9f   :  { %2091 = vmatpush3.bf16.msra.mxu1 %v2733_v6 }
  0xa0   :  { %2092 = vmatprep.subr.bf16.mxu1 %v2435_v0 }
  0xa1   :  { %2070 = vmatpush3.bf16.msra.mxu0 %v2745_v9 }
  0xa2   :  { %2071 = vmatprep.subr.bf16.mxu0 %v2435_v0 }
  0xa3   :  { %2094 = vmatpush3.bf16.msra.mxu1 %v2745_v9 }
  0xa4   :  { %2095 = vmatprep.subr.bf16.mxu1 %v2435_v0 }
  0xa5   :  { %2073 = vmatpush3.bf16.msra.mxu0 %v2757_v12 }
  0xa6   :  { %2074 = vmatprep.subr.bf16.mxu0 %v2435_v0 }
  0xa7   :  { %2097 = vmatpush3.bf16.msra.mxu1 %v2757_v12 }
  0xa8   :  { %2098 = vmatprep.subr.bf16.mxu1 %v2435_v0 }
  0xa9   :  { %2076 = vmatpush3.bf16.msra.mxu0 %v2769_v15 }
  0xaa   :  { %2101 = vmatprep.subr.bf16.mxu0 %v2435_v0 }
  0xab   :  { %2100 = vmatpush3.bf16.msra.mxu1 %v2769_v15 }
  0xac   :  { %2125 = vmatprep.subr.bf16.mxu1 %v2435_v0 }
 0x13f   :  { %v2778_v16 = vpop.f32.mrb[0].mxu0  ;;  %v2780_v17 = vpop.f32.mrb[0].mxu1 }
 0x140   :  { %v434_v18 = vmul.f32 %v2647_v30, %v2778_v16  ;;  %v1501_v19 = vpop.f32.mrb[1].mxu0  ;;  %v1536_v20 = vpop.f32.mrb[1].mxu1  ;;  %v588_v23 = vmul.f32 %v430_v21, %v2778_v16  ;;  %v744_v29 = vmul.f32 %v430_v21, %v2780_v17  ;;  %v666_v30 = vmul.f32 %v431_v28, %v2778_v16 }
 0x141   :  { %v822_v32 = vmul.f32 %v431_v28, %v2780_v17 }
 0x142   :  { %1640 = vmatmul.mubr.f32.vlgmr.msra.gmra.mrb[4].mxu0 %v434_v18 }
 0x143   :  { %2103 = vmatpush3.bf16.msra.mxu0 %v2679_v55  ;;  %1709 = vmatprep.mubr.msk.f32.mxu0 %vm2436_vm0, %v2437_v1 }
 0x144   :  { %2104 = vmatprep.subr.bf16.mxu0 %v2435_v0 }
 0x147   :  { %2106 = vmatpush3.bf16.msra.mxu0 %v2693_v59 }
 0x148   :  { %2107 = vmatprep.subr.bf16.mxu0 %v2435_v0 }
 0x14b   :  { %2109 = vmatpush3.bf16.msra.mxu0 %v2709_v62 }
 0x14c   :  { %2110 = vmatprep.subr.bf16.mxu0 %v2435_v0 }
 0x14f   :  { %2112 = vmatpush3.bf16.msra.mxu0 %v2721_v3 }
 0x150   :  { %2113 = vmatprep.subr.bf16.mxu0 %v2435_v0 }
 0x153   :  { %2115 = vmatpush3.bf16.msra.mxu0 %v2733_v6 }
 0x154   :  { %2116 = vmatprep.subr.bf16.mxu0 %v2435_v0 }
 0x157   :  { %2118 = vmatpush3.bf16.msra.mxu0 %v2745_v9 }
 0x158   :  { %2119 = vmatprep.subr.bf16.mxu0 %v2435_v0 }
 0x15b   :  { %2121 = vmatpush3.bf16.msra.mxu0 %v2757_v12 }
 0x15c   :  { %2122 = vmatprep.subr.bf16.mxu0 %v2435_v0 }
 0x15f   :  { %2124 = vmatpush3.bf16.msra.mxu0 %v2769_v15  ;;  %v2804_v22 = vpop.f32.mrb[2].mxu0 }
 0x160   :  { %v509_v24 = vmul.f32 %v2681_v56, %v2804_v22  ;;  %v1571_v25 = vpop.f32.mrb[3].mxu0  ;;  %2149 = vmatprep.subr.bf16.mxu0 %v2435_v0  ;;  %v2810_v26 = vpop.f32.mrb[2].mxu1  ;;  %v900_v33 = vmul.f32 %v432_v31, %v2804_v22  ;;  %v978_v36 = vmul.f32 %v433_v34, %v2804_v22 }
 0x161   :  { %v1606_v27 = vpop.f32.mrb[3].mxu1  ;;  %v1056_v35 = vmul.f32 %v432_v31, %v2810_v26 }
 0x162   :  { %1710 = vmatmul.mubr.f32.vlgmr.msra.gmra.mrb[6].mxu0 %v588_v23  ;;  %1675 = vmatmul.mubr.f32.vlgmr.msra.gmra.mrb[4].mxu1 %v509_v24 }
 0x163   :  { %2127 = vmatpush3.bf16.msra.mxu1 %v2679_v55  ;;  %2151 = vmatpush3.bf16.msra.mxu0 %v2679_v55 }
 0x164   :  { %2128 = vmatprep.subr.bf16.mxu1 %v2435_v0  ;;  %2152 = vmatprep.subr.bf16.mxu0 %v2435_v0 }
 0x165   :  { %1744 = vmatprep.mubr.msk.f32.mxu1 %vm2436_vm0, %v2437_v1  ;;  %1779 = vmatprep.mubr.msk.f32.mxu0 %vm2436_vm0, %v2437_v1 }
 0x167   :  { %2130 = vmatpush3.bf16.msra.mxu1 %v2693_v59  ;;  %2154 = vmatpush3.bf16.msra.mxu0 %v2693_v59 }
 0x168   :  { %2131 = vmatprep.subr.bf16.mxu1 %v2435_v0  ;;  %2155 = vmatprep.subr.bf16.mxu0 %v2435_v0 }
 0x16b   :  { %2133 = vmatpush3.bf16.msra.mxu1 %v2709_v62  ;;  %2157 = vmatpush3.bf16.msra.mxu0 %v2709_v62 }
 0x16c   :  { %2134 = vmatprep.subr.bf16.mxu1 %v2435_v0  ;;  %2158 = vmatprep.subr.bf16.mxu0 %v2435_v0 }
 0x16f   :  { %2136 = vmatpush3.bf16.msra.mxu1 %v2721_v3  ;;  %2160 = vmatpush3.bf16.msra.mxu0 %v2721_v3 }
 0x170   :  { %2137 = vmatprep.subr.bf16.mxu1 %v2435_v0  ;;  %2161 = vmatprep.subr.bf16.mxu0 %v2435_v0 }
 0x173   :  { %2139 = vmatpush3.bf16.msra.mxu1 %v2733_v6  ;;  %2163 = vmatpush3.bf16.msra.mxu0 %v2733_v6 }
 0x174   :  { %2140 = vmatprep.subr.bf16.mxu1 %v2435_v0  ;;  %2164 = vmatprep.subr.bf16.mxu0 %v2435_v0 }
 0x177   :  { %2142 = vmatpush3.bf16.msra.mxu1 %v2745_v9  ;;  %2166 = vmatpush3.bf16.msra.mxu0 %v2745_v9 }
 0x178   :  { %2143 = vmatprep.subr.bf16.mxu1 %v2435_v0  ;;  %2167 = vmatprep.subr.bf16.mxu0 %v2435_v0 }
 0x17b   :  { %2145 = vmatpush3.bf16.msra.mxu1 %v2757_v12  ;;  %2169 = vmatpush3.bf16.msra.mxu0 %v2757_v12 }
 0x17c   :  { %2146 = vmatprep.subr.bf16.mxu1 %v2435_v0  ;;  %2170 = vmatprep.subr.bf16.mxu0 %v2435_v0 }
 0x17f   :  { %2148 = vmatpush3.bf16.msra.mxu1 %v2769_v15  ;;  %2172 = vmatpush3.bf16.msra.mxu0 %v2769_v15 }
 0x180   :  { %2173 = vmatprep.subr.bf16.mxu1 %v2435_v0  ;;  %2197 = vmatprep.subr.bf16.mxu0 %v2435_v0 }
 0x182   :  { %1745 = vmatmul.mubr.f32.vlgmr.msra.gmra.mrb[6].mxu1 %v666_v30  ;;  %1780 = vmatmul.mubr.f32.vlgmr.msra.gmra.mrb[8].mxu0 %v744_v29 }
 0x183   :  { %2175 = vmatpush3.bf16.msra.mxu1 %v2679_v55  ;;  %2199 = vmatpush3.bf16.msra.mxu0 %v2679_v55 }
 0x184   :  { %2176 = vmatprep.subr.bf16.mxu1 %v2435_v0  ;;  %2200 = vmatprep.subr.bf16.mxu0 %v2435_v0 }
 0x185   :  { %1814 = vmatprep.mubr.msk.f32.mxu1 %vm2436_vm0, %v2437_v1  ;;  %1849 = vmatprep.mubr.msk.f32.mxu0 %vm2436_vm0, %v2437_v1 }
 0x187   :  { %2178 = vmatpush3.bf16.msra.mxu1 %v2693_v59  ;;  %2202 = vmatpush3.bf16.msra.mxu0 %v2693_v59 }
 0x188   :  { %2179 = vmatprep.subr.bf16.mxu1 %v2435_v0  ;;  %2203 = vmatprep.subr.bf16.mxu0 %v2435_v0 }
 0x18b   :  { %2181 = vmatpush3.bf16.msra.mxu1 %v2709_v62  ;;  %2205 = vmatpush3.bf16.msra.mxu0 %v2709_v62 }
 0x18c   :  { %2182 = vmatprep.subr.bf16.mxu1 %v2435_v0  ;;  %2206 = vmatprep.subr.bf16.mxu0 %v2435_v0 }
 0x18f   :  { %2184 = vmatpush3.bf16.msra.mxu1 %v2721_v3  ;;  %2208 = vmatpush3.bf16.msra.mxu0 %v2721_v3 }
 0x190   :  { %2185 = vmatprep.subr.bf16.mxu1 %v2435_v0  ;;  %2209 = vmatprep.subr.bf16.mxu0 %v2435_v0 }
 0x193   :  { %2187 = vmatpush3.bf16.msra.mxu1 %v2733_v6  ;;  %2211 = vmatpush3.bf16.msra.mxu0 %v2733_v6 }
 0x194   :  { %2188 = vmatprep.subr.bf16.mxu1 %v2435_v0  ;;  %2212 = vmatprep.subr.bf16.mxu0 %v2435_v0 }
 0x197   :  { %2190 = vmatpush3.bf16.msra.mxu1 %v2745_v9  ;;  %2214 = vmatpush3.bf16.msra.mxu0 %v2745_v9 }
 0x198   :  { %2191 = vmatprep.subr.bf16.mxu1 %v2435_v0  ;;  %2215 = vmatprep.subr.bf16.mxu0 %v2435_v0 }
 0x19b   :  { %2193 = vmatpush3.bf16.msra.mxu1 %v2757_v12  ;;  %2217 = vmatpush3.bf16.msra.mxu0 %v2757_v12 }
 0x19c   :  { %2194 = vmatprep.subr.bf16.mxu1 %v2435_v0  ;;  %2218 = vmatprep.subr.bf16.mxu0 %v2435_v0 }
 0x19f   :  { %2196 = vmatpush3.bf16.msra.mxu1 %v2769_v15  ;;  %2220 = vmatpush3.bf16.msra.mxu0 %v2769_v15 }
 0x1a0   :  { %2221 = vmatprep.subr.bf16.mxu1 %v2435_v0  ;;  %2245 = vmatprep.subr.bf16.mxu0 %v2435_v0 }
 0x1a2   :  { %1815 = vmatmul.mubr.f32.vlgmr.msra.gmra.mrb[8].mxu1 %v822_v32  ;;  %1850 = vmatmul.mubr.f32.vlgmr.msra.gmra.mrb[10].mxu0 %v900_v33 }
 0x1a3   :  { %2223 = vmatpush3.bf16.msra.mxu1 %v2679_v55  ;;  %1884 = vmatprep.mubr.msk.f32.mxu1 %vm2436_vm0, %v2437_v1 }
 0x1a4   :  { %2224 = vmatprep.subr.bf16.mxu1 %v2435_v0  ;;  %2247 = vmatpush3.bf16.msra.mxu0 %v2679_v55 }
 0x1a5   :  { %2248 = vmatprep.subr.bf16.mxu0 %v2435_v0  ;;  %1919 = vmatprep.mubr.msk.f32.mxu0 %vm2436_vm0, %v2437_v1 }
 0x1a7   :  { %2226 = vmatpush3.bf16.msra.mxu1 %v2693_v59 }
 0x1a8   :  { %2227 = vmatprep.subr.bf16.mxu1 %v2435_v0  ;;  %2250 = vmatpush3.bf16.msra.mxu0 %v2693_v59 }
 0x1a9   :  { %2251 = vmatprep.subr.bf16.mxu0 %v2435_v0 }
 0x1ab   :  { %2229 = vmatpush3.bf16.msra.mxu1 %v2709_v62 }
 0x1ac   :  { %2230 = vmatprep.subr.bf16.mxu1 %v2435_v0  ;;  %2253 = vmatpush3.bf16.msra.mxu0 %v2709_v62 }
 0x1ad   :  { %2254 = vmatprep.subr.bf16.mxu0 %v2435_v0 }
 0x1af   :  { %2232 = vmatpush3.bf16.msra.mxu1 %v2721_v3 }
 0x1b0   :  { %2233 = vmatprep.subr.bf16.mxu1 %v2435_v0  ;;  %2256 = vmatpush3.bf16.msra.mxu0 %v2721_v3 }
 0x1b1   :  { %2257 = vmatprep.subr.bf16.mxu0 %v2435_v0 }
 0x1b3   :  { %2235 = vmatpush3.bf16.msra.mxu1 %v2733_v6 }
 0x1b4   :  { %2236 = vmatprep.subr.bf16.mxu1 %v2435_v0  ;;  %2259 = vmatpush3.bf16.msra.mxu0 %v2733_v6 }
 0x1b5   :  { %2260 = vmatprep.subr.bf16.mxu0 %v2435_v0 }
 0x1b7   :  { %2238 = vmatpush3.bf16.msra.mxu1 %v2745_v9 }
 0x1b8   :  { %2239 = vmatprep.subr.bf16.mxu1 %v2435_v0  ;;  %2262 = vmatpush3.bf16.msra.mxu0 %v2745_v9 }
 0x1b9   :  { %2263 = vmatprep.subr.bf16.mxu0 %v2435_v0 }
 0x1bb   :  { %2241 = vmatpush3.bf16.msra.mxu1 %v2757_v12 }
 0x1bc   :  { %2242 = vmatprep.subr.bf16.mxu1 %v2435_v0  ;;  %2265 = vmatpush3.bf16.msra.mxu0 %v2757_v12 }
 0x1bd   :  { %2266 = vmatprep.subr.bf16.mxu0 %v2435_v0 }
 0x1bf   :  { %2244 = vmatpush3.bf16.msra.mxu1 %v2769_v15 }
 0x1c0   :  { %2269 = vmatprep.subr.bf16.mxu1 %v2435_v0  ;;  %2268 = vmatpush3.bf16.msra.mxu0 %v2769_v15 }
 0x1c2   :  { %1885 = vmatmul.mubr.f32.vlgmr.msra.gmra.mrb[10].mxu1 %v978_v36 }
 0x1c3   :  { %2271 = vmatpush3.bf16.msra.mxu1 %v2679_v55  ;;  %1920 = vmatmul.mubr.f32.vlgmr.msra.gmra.mrb[12].mxu0 %v1056_v35 }
 0x1c4   :  { %2272 = vmatprep.subr.bf16.mxu1 %v2435_v0  ;;  %1954 = vmatprep.mubr.msk.f32.mxu1 %vm2436_vm0, %v2437_v1  ;;  %v1134_v1 = vmul.f32 %v433_v34, %v2810_v26 }
 0x1c7   :  { %2274 = vmatpush3.bf16.msra.mxu1 %v2693_v59 }
 0x1c8   :  { %2275 = vmatprep.subr.bf16.mxu1 %v2435_v0 }
 0x1cb   :  { %2277 = vmatpush3.bf16.msra.mxu1 %v2709_v62 }
 0x1cc   :  { %2278 = vmatprep.subr.bf16.mxu1 %v2435_v0 }
 0x1cf   :  { %2280 = vmatpush3.bf16.msra.mxu1 %v2721_v3 }
 0x1d0   :  { %2281 = vmatprep.subr.bf16.mxu1 %v2435_v0 }
 0x1d3   :  { %2283 = vmatpush3.bf16.msra.mxu1 %v2733_v6 }
 0x1d4   :  { %2284 = vmatprep.subr.bf16.mxu1 %v2435_v0 }
 0x1d7   :  { %2286 = vmatpush3.bf16.msra.mxu1 %v2745_v9 }
 0x1d8   :  { %2287 = vmatprep.subr.bf16.mxu1 %v2435_v0 }
 0x1db   :  { %2289 = vmatpush3.bf16.msra.mxu1 %v2757_v12 }
 0x1dc   :  { %2290 = vmatprep.subr.bf16.mxu1 %v2435_v0  ;;  %v580_v0 = vstv %s2977_s12  ;;  %s2441_s12 = smov 20  }
 0x1df   :  { %2292 = vmatpush3.bf16.msra.mxu1 %v2769_v15 }
 0x1e2   :  { %1955 = vmatmul.mubr.f32.vlgmr.msra.gmra.mrb[12].mxu1 %v1134_v1 }
 0x215   :  { %v501_v38 = vpop.f32.mrb[4].mxu0 }
 0x216   :  { %v506_v39 = vadd.f32 %v505_v37, %v501_v38  ;;  %v1641_v40 = vpop.f32.mrb[5].mxu0 }
 0x218   :  { %508 = vst.msk [vmem:[#allocation12] sm:$0xff] %vm507_vm1, %v506_v39 }
 0x235   :  { %v655_v41 = vpop.f32.mrb[6].mxu0  ;;  %v576_v42 = vpop.f32.mrb[4].mxu1 }
 0x236   :  { %v1711_v43 = vpop.f32.mrb[7].mxu0  ;;  %v1676_v44 = vpop.f32.mrb[5].mxu1  ;;  %v659_v45 = vadd.f32 %v655_v41, %v505_v37  ;;  %v581_v46 = vadd.f32 %v580_v0, %v576_v42 }
 0x238   :  { %661 = vrot.lane.b32.xlu0 %v659_v45, %s2434_s16  ;;  %s2442_s16 = smov 24  }
 0x23c   :  { %583 = vrot.lane.b32.xlu0 %v581_v46, %s2438_s28 }
 0x255   :  { %v733_v47 = vpop.f32.mrb[6].mxu1  ;;  %v811_v48 = vpop.f32.mrb[8].mxu0 }
 0x256   :  { %v737_v49 = vadd.f32 %v733_v47, %v505_v37  ;;  %v1746_v50 = vpop.f32.mrb[7].mxu1  ;;  %v1781_v51 = vpop.f32.mrb[9].mxu0  ;;  %v815_v52 = vadd.f32 %v811_v48, %v505_v37 }
 0x258   :  { %739 = vrot.lane.b32.xlu1 %v737_v49, %s2439_s11 }
 0x25c   :  { %817 = vrot.lane.b32.xlu1 %v815_v52, %s2440_s27 }
 0x275   :  { %v889_v53 = vpop.f32.mrb[8].mxu1  ;;  %v967_v54 = vpop.f32.mrb[10].mxu0 }
 0x276   :  { %v893_v55 = vadd.f32 %v889_v53, %v505_v37  ;;  %v971_v56 = vadd.f32 %v967_v54, %v580_v0  ;;  %v1816_v57 = vpop.f32.mrb[9].mxu1  ;;  %v1851_v58 = vpop.f32.mrb[11].mxu0 }
 0x278   :  { %895 = vrot.lane.b32.xlu0 %v893_v55, %s2441_s12  ;;  %973 = vrot.lane.b32.xlu1 %v971_v56, %s2442_s16 }
 0x295   :  { %v1045_v59 = vpop.f32.mrb[10].mxu1 }
 0x296   :  { %v1049_v60 = vadd.f32 %v1045_v59, %v580_v0  ;;  %v1886_v61 = vpop.f32.mrb[11].mxu1  ;;  %v1123_v62 = vpop.f32.mrb[12].mxu0 }
 0x297   :  { %v1127_v63 = vadd.f32 %v1123_v62, %v580_v0  ;;  %v1921_v2 = vpop.f32.mrb[13].mxu0 }
 0x298   :  { %1051 = vrot.lane.b32.xlu0 %v1049_v60, %s2443_s29 }
 0x299   :  { %1129 = vrot.lane.b32.xlu1 %v1127_v63, %s2444_s30 }
 0x2aa   :  { %v662_v3 = vpop.permute.xlu0 %661 }
 0x2ae   :  { %v584_v4 = vpop.permute.xlu0 %583 }
 0x2af   :  { %587 = vst.msk [vmem:[#allocation12] sm:$0xff] %vm586_vm2, %v584_v4 }
 0x2b0   :  { %665 = vst.msk [vmem:[#allocation12] sm:$0xff] %vm664_vm3, %v662_v3 }
 0x2b5   :  { %v1201_v5 = vpop.f32.mrb[12].mxu1 }
 0x2b6   :  { %v1205_v6 = vadd.f32 %v1201_v5, %v580_v0  ;;  %v1956_v7 = vpop.f32.mrb[13].mxu1 }
 0x2b8   :  { %1207 = vrot.lane.b32.xlu0 %v1205_v6, %s2445_s14 }
 0x2ca   :  { %v740_v8 = vpop.permute.xlu1 %739 }
 0x2cb   :  { %743 = vst.msk [vmem:[#allocation12] sm:$0xff] %vm742_vm4, %v740_v8 }
 0x2ce   :  { %v818_v9 = vpop.permute.xlu1 %817 }
 0x2cf   :  { %821 = vst.msk [vmem:[#allocation12] sm:$0xff] %vm820_vm5, %v818_v9 }
 0x2ea   :  { %v896_v10 = vpop.permute.xlu0 %895  ;;  %v974_v11 = vpop.permute.xlu1 %973 }
 0x2eb   :  { %899 = vst.msk [vmem:[#allocation12] sm:$0xff] %vm898_vm6, %v896_v10 }
 0x2ec   :  { %977 = vst.msk [vmem:[#allocation12] sm:$0xff] %vm976_vm7, %v974_v11 }
 0x30a   :  { %v1052_v12 = vpop.permute.xlu0 %1051 }
 0x30b   :  { %1055 = vst.msk [vmem:[#allocation12] sm:$0xff] %vm1054_vm8, %v1052_v12  ;;  %v1130_v13 = vpop.permute.xlu1 %1129 }
 0x30c   :  { %1133 = vst.msk [vmem:[#allocation12] sm:$0xff] %vm1132_vm9, %v1130_v13 }
 0x32a   :  { %v1208_v14 = vpop.permute.xlu0 %1207 }
 0x32b   :  { %1211 = vst.msk [vmem:[#allocation12] sm:$0xff] %vm1210_vm10, %v1208_v14 }
 0x32c   :  { %2410 = shalt.err (!%p2407_p8)
}
 0x32d   :  { %s2411_s1 = scalar_lea.hbm %s2978_s13, 128 }
 0x32e   :  { %p2412_p9 = scmp.ne.s32.totalorder %s2978_s13, %s2411_s1  ;;  %p2415_p10 = scmp.lt.u32.totalorder %s2411_s1, %s2978_s13 }
 0x330   :  { %p2417_p11 = pnand %p2415_p10, %p2412_p9 }
 0x332   :  { %2420 = shalt.err (!%p2417_p11)
}
 0x333   :  { %1221 = dma.vmem_to_hbm [thread:$0]  %s1219_s26, 128, %s2978_s13, [#allocation6]  }
 0x334   :  { %2427 = dma.done.wait [#allocation6], 128  }
 0x335   :  { %2428 = vsyncadd [#allocation6], 4294967168 }
 0x336   :  { %1225 = vsyncpa [#allocation5], 1 }
 0x337   :  { %1226 = vsyncpa [#allocation8], 1 }
 0x338   :  { %1227 = vsyncpa [#allocation11], 1 }
 0x339   :  { %1228 = vsyncpa [#allocation6], 1 }

</bundles_post_ra>
